<compile_context>
chip_gen: v7x
topology: tpu7x:2x2x1
jax: 0.10.0
libtpu: 0.0.40
codegen_flags: <defaults>
</compile_context>

<pallas_src>
import jax
import jax.numpy as jnp
from jax.experimental import pallas as pl
from jax.experimental.pallas import tpu as pltpu


def _round_up(x, m):
    return ((x + m - 1) // m) * m


def fasttext_kernel(ids_ref, tbl_ref, w_ref, b_ref, o_ref):
    """Fused gather + mean-pool + linear for one batch tile.

    ids_ref : (TB, L)   int32  token ids (streamed per grid step)
    tbl_ref : (Vp, Ep)  f32    zero-padded embedding table (VMEM resident)
    w_ref   : (Ep, Cp)  f32    fc weight^T with 1/L folded in (VMEM resident)
    b_ref   : (1, Cp)   f32    fc bias (VMEM resident)
    o_ref   : (TB, Cp)  f32    logits tile
    """
    tb, seq_len = ids_ref.shape
    vp = tbl_ref.shape[0]

    ids = ids_ref[...]                                            # (TB, L) int32

    # Token-count ("multi-hot") matrix: counts[b, v] = #{l : ids[b, l] == v}.
    # Built with L VPU compare+adds; the lane iota is hoisted out of the loop
    # (JAX does not CSE broadcast_in_dim).
    lane_v = jax.lax.broadcasted_iota(jnp.int32, (tb, vp), 1)     # (TB, Vp)
    counts = jnp.zeros((tb, vp), jnp.float32)
    for l in range(seq_len):                                      # L static -> unrolled
        counts = counts + jnp.where(ids[:, l:l + 1] == lane_v, 1.0, 0.0)

    # Gather + sum-over-L in one MXU matmul:  pooled = sum_l table[ids[b,l], :]
    pooled = jnp.dot(counts, tbl_ref[...],
                     preferred_element_type=jnp.float32)          # (TB, Ep)

    # Linear layer (1/L of the AvgPool1d already folded into w_ref).
    y = jnp.dot(pooled, w_ref[...],
                preferred_element_type=jnp.float32)               # (TB, Cp)
    o_ref[...] = y + b_ref[...]                                   # broadcast bias


def _choose_batch_tile(batch, seq_len, cp, vp):
    """Byte-budget-driven batch tile (sublane-aligned, >=2 grid steps if possible)."""
    # Streamed bytes per example (ids in + padded logits out), x2 double buffer.
    per_example = (seq_len * 4 + cp * 4) * 2
    tb = (4 * 1024 * 1024) // max(1, per_example)
    # Keep the in-kernel (TB, Vp) counts / one-hot temporaries modest (<~8 MiB).
    tb = min(tb, (8 * 1024 * 1024) // max(1, vp * 4))
    tb = min(tb, 4096)
    bp8 = _round_up(batch, 8)
    if bp8 >= 16:
        tb = min(tb, bp8 // 2)     # guarantee >= 2 grid steps (v7x megacore)
    tb = min(tb, bp8)              # never pad the batch beyond one sublane group
    tb = max(8, (tb // 8) * 8)
    return tb


@jax.jit
def fasttext_forward(token_ids, emb_table, fc_weight, fc_bias):
    """
    token_ids : (B, L) int   token ids
    emb_table : (V, E) f32   nn.Embedding weight
    fc_weight : (C, E) f32   nn.Linear weight (PyTorch convention)
    fc_bias   : (C,)   f32   nn.Linear bias
    returns   : (B, C) f32   logits
    """
    B, L = token_ids.shape
    V, E = emb_table.shape
    C = fc_weight.shape[0]

    # ---- wrapper-side layout plumbing (all dims padded to lane multiples) ----
    Vp = _round_up(V, 128)
    Ep = _round_up(E, 128)
    Cp = _round_up(max(C, 1), 128)

    resident_bytes = (Vp * Ep + Ep * Cp + Cp) * 4
    if resident_bytes > 16 * 1024 * 1024:
        # TODO(synk): large-vocab fallback (HBM table + manual DMA gather).
        raise NotImplementedError(
            "Embedding table too large for the VMEM-resident fused-gather path."
        )

    tbl_p = jnp.zeros((Vp, Ep), jnp.float32).at[:V, :E].set(
        emb_table.astype(jnp.float32))
    # Fold the AvgPool1d 1/L into the weights; bias stays unscaled.
    w_p = jnp.zeros((Ep, Cp), jnp.float32).at[:E, :C].set(
        fc_weight.T.astype(jnp.float32) * (1.0 / float(L)))
    b_p = jnp.zeros((1, Cp), jnp.float32).at[:, :C].set(
        fc_bias.astype(jnp.float32))

    TB = _choose_batch_tile(B, L, Cp, Vp)
    Bp = _round_up(B, TB)
    ids = token_ids.astype(jnp.int32)
    if Bp != B:
        # Pad with token id 0; padded rows are sliced off the output below.
        ids = jnp.pad(ids, ((0, Bp - B), (0, 0)))

    grid = (Bp // TB,)
    cost = pl.CostEstimate(
        flops=2 * Bp * Vp * Ep + 2 * Bp * Ep * Cp + Bp * L * Vp + Bp * Cp,
        transcendentals=0,
        bytes_accessed=Bp * L * 4 + resident_bytes + Bp * Cp * 4,
    )

    out_p = pl.pallas_call(
        fasttext_kernel,
        out_shape=jax.ShapeDtypeStruct((Bp, Cp), jnp.float32),
        grid=grid,
        in_specs=[
            # Token ids: the only streamed / double-buffered input.
            pl.BlockSpec((TB, L), lambda i: (i, 0)),
            # Table, weights, bias: constant-index full blocks -> VMEM residents.
            pl.BlockSpec((Vp, Ep), lambda i: (0, 0)),
            pl.BlockSpec((Ep, Cp), lambda i: (0, 0)),
            pl.BlockSpec((1, Cp), lambda i: (0, 0)),
        ],
        out_specs=pl.BlockSpec((TB, Cp), lambda i: (i, 0)),
        compiler_params=pltpu.CompilerParams(
            dimension_semantics=("parallel",),
            vmem_limit_bytes=48 * 1024 * 1024,
        ),
        cost_estimate=cost,
    )(ids, tbl_p, w_p, b_p)

    return out_p[:B, :C]


if __name__ == "__main__":
    # Small, deterministic configuration consistent with the module.
    vocab_size = 50
    embedding_size = 32
    max_length = 8       # seq length L == AvgPool1d kernel_size
    label_num = 4
    batch = 2

    key = jax.random.PRNGKey(0)
    k_ids, k_emb, k_w, k_b = jax.random.split(key, 4)

    token_ids = jax.random.randint(
        k_ids, (batch, max_length), minval=0, maxval=vocab_size, dtype=jnp.int32
    )
    # Deterministic synthetic parameters (shapes match nn.Embedding / nn.Linear).
    emb_table = jax.random.normal(k_emb, (vocab_size, embedding_size), dtype=jnp.float32)
    fc_weight = jax.random.normal(k_w, (label_num, embedding_size), dtype=jnp.float32) * 0.1
    fc_bias = jax.random.normal(k_b, (label_num,), dtype=jnp.float32) * 0.1

    out = fasttext_forward(token_ids, emb_table, fc_weight, fc_bias)
    out = jax.block_until_ready(out)

    # Reference check in plain JAX (same math as the PyTorch forward).
    ref = jnp.take(emb_table, token_ids, axis=0).mean(axis=1) @ fc_weight.T + fc_bias
    assert out.shape == (batch, label_num)
    assert jnp.allclose(out, ref, atol=1e-4, rtol=1e-4), (
        f"max abs err = {jnp.max(jnp.abs(out - ref))}"
    )

    print("KERNEL_OK")
</pallas_src>

<mosaic_0001>
module attributes {stable_mosaic.version = 11 : i64} {
  func.func @fasttext_kernel(%arg0: i32, %arg1: memref<8x8xi32, #tpu.memory_space<vmem>>, %arg2: memref<128x128xf32, #tpu.memory_space<vmem>>, %arg3: memref<128x128xf32, #tpu.memory_space<vmem>>, %arg4: memref<1x128xf32, #tpu.memory_space<vmem>>, %arg5: memref<8x128xf32, #tpu.memory_space<vmem>>) attributes {dimension_semantics = [#tpu.dimension_semantics<parallel>], iteration_bounds = array<i64: 1>, scalar_prefetch = 0 : i64, scratch_operands = 0 : i64, tpu.core_type = #tpu.core_type<tc>, window_params = [{transform_indices = @transform_0, window_bounds = array<i64: 8, 8>}, {pipeline_mode = #tpu.pipeline_mode<synchronous>, transform_indices = @transform_1, window_bounds = array<i64: 128, 128>}, {pipeline_mode = #tpu.pipeline_mode<synchronous>, transform_indices = @transform_2, window_bounds = array<i64: 128, 128>}, {pipeline_mode = #tpu.pipeline_mode<synchronous>, transform_indices = @transform_3, window_bounds = array<i64: 1, 128>}, {transform_indices = @transform_4, window_bounds = array<i64: 8, 128>}]} {
    %c0 = arith.constant 0 : index
    %c0_0 = arith.constant 0 : index
    %0 = vector.load %arg1[%c0, %c0_0] : memref<8x8xi32, #tpu.memory_space<vmem>>, vector<8x8xi32>
    %1 = tpu.iota {dimensions = array<i32: 1>} : vector<8x128xi32>
    %cst = arith.constant 0.000000e+00 : f32
    %2 = vector.broadcast %cst : f32 to vector<8x128xf32>
    %3 = vector.extract_strided_slice %0 {offsets = [0, 0], sizes = [8, 1], strides = [1, 1]} : vector<8x8xi32> to vector<8x1xi32>
    %4 = vector.broadcast %3 : vector<8x1xi32> to vector<8x128xi32>
    %5 = arith.cmpi eq, %4, %1 : vector<8x128xi32>
    %cst_1 = arith.constant 1.000000e+00 : f32
    %cst_2 = arith.constant 0.000000e+00 : f32
    %6 = vector.broadcast %cst_1 : f32 to vector<8x128xf32>
    %7 = vector.broadcast %cst_2 : f32 to vector<8x128xf32>
    %8 = arith.select %5, %6, %7 : vector<8x128xi1>, vector<8x128xf32>
    %9 = arith.addf %2, %8 : vector<8x128xf32>
    %10 = vector.extract_strided_slice %0 {offsets = [0, 1], sizes = [8, 1], strides = [1, 1]} : vector<8x8xi32> to vector<8x1xi32>
    %11 = vector.broadcast %10 : vector<8x1xi32> to vector<8x128xi32>
    %12 = arith.cmpi eq, %11, %1 : vector<8x128xi32>
    %cst_3 = arith.constant 1.000000e+00 : f32
    %cst_4 = arith.constant 0.000000e+00 : f32
    %13 = vector.broadcast %cst_3 : f32 to vector<8x128xf32>
    %14 = vector.broadcast %cst_4 : f32 to vector<8x128xf32>
    %15 = arith.select %12, %13, %14 : vector<8x128xi1>, vector<8x128xf32>
    %16 = arith.addf %9, %15 : vector<8x128xf32>
    %17 = vector.extract_strided_slice %0 {offsets = [0, 2], sizes = [8, 1], strides = [1, 1]} : vector<8x8xi32> to vector<8x1xi32>
    %18 = vector.broadcast %17 : vector<8x1xi32> to vector<8x128xi32>
    %19 = arith.cmpi eq, %18, %1 : vector<8x128xi32>
    %cst_5 = arith.constant 1.000000e+00 : f32
    %cst_6 = arith.constant 0.000000e+00 : f32
    %20 = vector.broadcast %cst_5 : f32 to vector<8x128xf32>
    %21 = vector.broadcast %cst_6 : f32 to vector<8x128xf32>
    %22 = arith.select %19, %20, %21 : vector<8x128xi1>, vector<8x128xf32>
    %23 = arith.addf %16, %22 : vector<8x128xf32>
    %24 = vector.extract_strided_slice %0 {offsets = [0, 3], sizes = [8, 1], strides = [1, 1]} : vector<8x8xi32> to vector<8x1xi32>
    %25 = vector.broadcast %24 : vector<8x1xi32> to vector<8x128xi32>
    %26 = arith.cmpi eq, %25, %1 : vector<8x128xi32>
    %cst_7 = arith.constant 1.000000e+00 : f32
    %cst_8 = arith.constant 0.000000e+00 : f32
    %27 = vector.broadcast %cst_7 : f32 to vector<8x128xf32>
    %28 = vector.broadcast %cst_8 : f32 to vector<8x128xf32>
    %29 = arith.select %26, %27, %28 : vector<8x128xi1>, vector<8x128xf32>
    %30 = arith.addf %23, %29 : vector<8x128xf32>
    %31 = vector.extract_strided_slice %0 {offsets = [0, 4], sizes = [8, 1], strides = [1, 1]} : vector<8x8xi32> to vector<8x1xi32>
    %32 = vector.broadcast %31 : vector<8x1xi32> to vector<8x128xi32>
    %33 = arith.cmpi eq, %32, %1 : vector<8x128xi32>
    %cst_9 = arith.constant 1.000000e+00 : f32
    %cst_10 = arith.constant 0.000000e+00 : f32
    %34 = vector.broadcast %cst_9 : f32 to vector<8x128xf32>
    %35 = vector.broadcast %cst_10 : f32 to vector<8x128xf32>
    %36 = arith.select %33, %34, %35 : vector<8x128xi1>, vector<8x128xf32>
    %37 = arith.addf %30, %36 : vector<8x128xf32>
    %38 = vector.extract_strided_slice %0 {offsets = [0, 5], sizes = [8, 1], strides = [1, 1]} : vector<8x8xi32> to vector<8x1xi32>
    %39 = vector.broadcast %38 : vector<8x1xi32> to vector<8x128xi32>
    %40 = arith.cmpi eq, %39, %1 : vector<8x128xi32>
    %cst_11 = arith.constant 1.000000e+00 : f32
    %cst_12 = arith.constant 0.000000e+00 : f32
    %41 = vector.broadcast %cst_11 : f32 to vector<8x128xf32>
    %42 = vector.broadcast %cst_12 : f32 to vector<8x128xf32>
    %43 = arith.select %40, %41, %42 : vector<8x128xi1>, vector<8x128xf32>
    %44 = arith.addf %37, %43 : vector<8x128xf32>
    %45 = vector.extract_strided_slice %0 {offsets = [0, 6], sizes = [8, 1], strides = [1, 1]} : vector<8x8xi32> to vector<8x1xi32>
    %46 = vector.broadcast %45 : vector<8x1xi32> to vector<8x128xi32>
    %47 = arith.cmpi eq, %46, %1 : vector<8x128xi32>
    %cst_13 = arith.constant 1.000000e+00 : f32
    %cst_14 = arith.constant 0.000000e+00 : f32
    %48 = vector.broadcast %cst_13 : f32 to vector<8x128xf32>
    %49 = vector.broadcast %cst_14 : f32 to vector<8x128xf32>
    %50 = arith.select %47, %48, %49 : vector<8x128xi1>, vector<8x128xf32>
    %51 = arith.addf %44, %50 : vector<8x128xf32>
    %52 = vector.extract_strided_slice %0 {offsets = [0, 7], sizes = [8, 1], strides = [1, 1]} : vector<8x8xi32> to vector<8x1xi32>
    %53 = vector.broadcast %52 : vector<8x1xi32> to vector<8x128xi32>
    %54 = arith.cmpi eq, %53, %1 : vector<8x128xi32>
    %cst_15 = arith.constant 1.000000e+00 : f32
    %cst_16 = arith.constant 0.000000e+00 : f32
    %55 = vector.broadcast %cst_15 : f32 to vector<8x128xf32>
    %56 = vector.broadcast %cst_16 : f32 to vector<8x128xf32>
    %57 = arith.select %54, %55, %56 : vector<8x128xi1>, vector<8x128xf32>
    %58 = arith.addf %51, %57 : vector<8x128xf32>
    %c0_17 = arith.constant 0 : index
    %c0_18 = arith.constant 0 : index
    %59 = vector.load %arg2[%c0_17, %c0_18] : memref<128x128xf32, #tpu.memory_space<vmem>>, vector<128x128xf32>
    %cst_19 = arith.constant dense<0.000000e+00> : vector<8x128xf32>
    %60 = tpu.matmul %58, %59, %cst_19 {dimension_numbers = #tpu.dot_dimension_numbers<[1], [0], [0], [1], [0, 0, 1, 1], [], []>} : vector<8x128xf32>, vector<128x128xf32>, vector<8x128xf32> -> vector<8x128xf32>
    %c0_20 = arith.constant 0 : index
    %c0_21 = arith.constant 0 : index
    %61 = vector.load %arg3[%c0_20, %c0_21] : memref<128x128xf32, #tpu.memory_space<vmem>>, vector<128x128xf32>
    %cst_22 = arith.constant dense<0.000000e+00> : vector<8x128xf32>
    %62 = tpu.matmul %60, %61, %cst_22 {dimension_numbers = #tpu.dot_dimension_numbers<[1], [0], [0], [1], [0, 0, 1, 1], [], []>} : vector<8x128xf32>, vector<128x128xf32>, vector<8x128xf32> -> vector<8x128xf32>
    %c0_23 = arith.constant 0 : index
    %c0_24 = arith.constant 0 : index
    %63 = vector.load %arg4[%c0_23, %c0_24] : memref<1x128xf32, #tpu.memory_space<vmem>>, vector<1x128xf32>
    %64 = vector.broadcast %63 : vector<1x128xf32> to vector<8x128xf32>
    %65 = arith.addf %62, %64 : vector<8x128xf32>
    %c0_25 = arith.constant 0 : index
    %c0_26 = arith.constant 0 : index
    %66 = vector.load %arg5[%c0_25, %c0_26] : memref<8x128xf32, #tpu.memory_space<vmem>>, vector<8x128xf32>
    tpu.vector_store %arg5[%c0_25, %c0_26], %65 {strides = array<i32>} : memref<8x128xf32, #tpu.memory_space<vmem>>, vector<8x128xf32>,
    return
  }
  func.func @transform_0(%arg0: i32) -> (i32, i32) {
    %c0_i32 = arith.constant 0 : i32
    %c0_i32_0 = arith.constant 0 : i32
    return %arg0, %c0_i32 : i32, i32
  }
  func.func @transform_1(%arg0: i32) -> (i32, i32) {
    %c0_i32 = arith.constant 0 : i32
    %c0_i32_0 = arith.constant 0 : i32
    %c0_i32_1 = arith.constant 0 : i32
    return %c0_i32, %c0_i32_0 : i32, i32
  }
  func.func @transform_2(%arg0: i32) -> (i32, i32) {
    %c0_i32 = arith.constant 0 : i32
    %c0_i32_0 = arith.constant 0 : i32
    %c0_i32_1 = arith.constant 0 : i32
    return %c0_i32, %c0_i32_0 : i32, i32
  }
  func.func @transform_3(%arg0: i32) -> (i32, i32) {
    %c0_i32 = arith.constant 0 : i32
    %c0_i32_0 = arith.constant 0 : i32
    %c0_i32_1 = arith.constant 0 : i32
    return %c0_i32, %c0_i32_0 : i32, i32
  }
  func.func @transform_4(%arg0: i32) -> (i32, i32) {
    %c0_i32 = arith.constant 0 : i32
    %c0_i32_0 = arith.constant 0 : i32
    return %arg0, %c0_i32 : i32, i32
  }
}

</mosaic_0001>

<bundles_post_ra>
// kernel: fasttext_forward.1
= control target key start
LH: loop header
LB: loop body
LE: loop exit
PB: predicated region body
PF: predicated region fallthrough
CT: control target
= control target key end

     0   :  { %v425_v0 = vmov 2   ;;  %v426_v1 = vmov 0   ;;  %v427_v7 = vmov 0.0|0.0   ;;  %v428_v10 = vmov 3   ;;  %s592_s0 = inlined_call_operand.vmem [shape: s32[8,8], index: 0, kind: input, shape index: {}]   ;;  %s593_s1 = inlined_call_operand.vmem [shape: f32[128,128], index: 1, kind: input, shape index: {}]   ;;  %s594_s2 = inlined_call_operand.vmem [shape: f32[128,128], index: 2, kind: input, shape index: {}]   ;;  %s595_s3 = inlined_call_operand.vmem [shape: f32[1,128], index: 3, kind: input, shape index: {}]   ;;  %s596_s4 = inlined_call_operand.vmem [shape: f32[8,128], index: 4, kind: output, shape index: {}]  }
   0x1   :  { %418 = vset.pattern.permute.xlu1 %v425_v0  ;;  %416 = vset.pattern.permute.xlu0 %v426_v1  ;;  %v17_v2 = vld [vmem:[%s592_s0] sm:$0xff]  ;;  %v69_v4 = vld [vmem:[%s593_s1 + $0x8] sm:$0xff]  ;;  %v70_v5 = vld [vmem:[%s593_s1 + $0x10] sm:$0xff]  ;;  %v429_v11 = vmov 1   ;;  %v430_v17 = vmov 4   ;;  %v431_v18 = vmov 5   ;;  %v18_v59 = vlaneseq }
   0x2   :  { %v68_v3 = vld [vmem:[%s593_s1] sm:$0xff]  ;;  %33 = vperm.xlu1 %418, %v17_v2   ;;  %21 = vperm.xlu0 %416, %v17_v2   ;;  %v71_v6 = vld [vmem:[%s593_s1 + $0x18] sm:$0xff]  ;;  %v73_v13 = vld [vmem:[%s593_s1 + $0x28] sm:$0xff]  ;;  %v432_v22 = vmov 6   ;;  %v433_v23 = vmov 7   ;;  %vm434_vm0 = vmmov 0  }
   0x3   :  { %357 = vmatprep.subr.bf16.mxu0 %v427_v7  ;;  %v358_v8 = vpack.c.bf16 %v69_v4, %v68_v3  ;;  %381 = vmatprep.subr.bf16.mxu1 %v427_v7  ;;  %v361_v9 = vpack.c.bf16 %v71_v6, %v70_v5  ;;  %v72_v12 = vld [vmem:[%s593_s1 + $0x20] sm:$0xff]  ;;  %v74_v15 = vld [vmem:[%s593_s1 + $0x30] sm:$0xff]  ;;  %v75_v16 = vld [vmem:[%s593_s1 + $0x38] sm:$0xff]  ;;  %v435_v31 = vmov 0.0   ;;  %v19_v62 = vand.u32 127, %v18_v59 }
   0x4   :  { %v364_v14 = vpack.c.bf16 %v73_v13, %v72_v12  ;;  %v367_v19 = vpack.c.bf16 %v75_v16, %v74_v15  ;;  %v76_v20 = vld [vmem:[%s593_s1 + $0x40] sm:$0xff]  ;;  %v77_v21 = vld [vmem:[%s593_s1 + $0x48] sm:$0xff]  ;;  %v78_v25 = vld [vmem:[%s593_s1 + $0x50] sm:$0xff]  ;;  %319 = vmatprep.mubr.msk.f32.mxu0 %vm434_vm0, %v435_v31  ;;  %354 = vmatprep.mubr.msk.f32.mxu1 %vm434_vm0, %v435_v31 }
   0x5   :  { %359 = vmatpush3.bf16.msra.mxu0 %v358_v8  ;;  %v370_v24 = vpack.c.bf16 %v77_v21, %v76_v20  ;;  %v79_v26 = vld [vmem:[%s593_s1 + $0x58] sm:$0xff]  ;;  %v80_v28 = vld [vmem:[%s593_s1 + $0x60] sm:$0xff]  ;;  %v81_v29 = vld [vmem:[%s593_s1 + $0x68] sm:$0xff] }
   0x6   :  { %419 = vset.pattern.permute.xlu1 %v428_v10  ;;  %417 = vset.pattern.permute.xlu0 %v429_v11  ;;  %v373_v27 = vpack.c.bf16 %v79_v26, %v78_v25  ;;  %v376_v30 = vpack.c.bf16 %v81_v29, %v80_v28  ;;  %v82_v32 = vld [vmem:[%s593_s1 + $0x70] sm:$0xff]  ;;  %v83_v33 = vld [vmem:[%s593_s1 + $0x78] sm:$0xff]  ;;  %v154_v34 = vld [vmem:[%s594_s2] sm:$0xff] }
   0x7   :  { %39 = vperm.xlu1 %419, %v17_v2   ;;  %27 = vperm.xlu0 %417, %v17_v2   ;;  %v155_v35 = vld [vmem:[%s594_s2 + $0x8] sm:$0xff]  ;;  %v156_v36 = vld [vmem:[%s594_s2 + $0x10] sm:$0xff]  ;;  %v157_v38 = vld [vmem:[%s594_s2 + $0x18] sm:$0xff]  ;;  %v379_v39 = vpack.c.bf16 %v83_v33, %v82_v32 }
   0x8   :  { %360 = vmatprep.subr.bf16.mxu0 %v427_v7  ;;  %v382_v37 = vpack.c.bf16 %v155_v35, %v154_v34  ;;  %v385_v40 = vpack.c.bf16 %v157_v38, %v156_v36  ;;  %v158_v41 = vld [vmem:[%s594_s2 + $0x20] sm:$0xff]  ;;  %v159_v42 = vld [vmem:[%s594_s2 + $0x28] sm:$0xff]  ;;  %v160_v44 = vld [vmem:[%s594_s2 + $0x30] sm:$0xff] }
   0x9   :  { %362 = vmatpush3.bf16.msra.mxu0 %v361_v9  ;;  %v388_v43 = vpack.c.bf16 %v159_v42, %v158_v41  ;;  %v161_v45 = vld [vmem:[%s594_s2 + $0x38] sm:$0xff]  ;;  %v162_v47 = vld [vmem:[%s594_s2 + $0x40] sm:$0xff]  ;;  %v163_v48 = vld [vmem:[%s594_s2 + $0x48] sm:$0xff] }
   0xa   :  { %363 = vmatprep.subr.bf16.mxu0 %v427_v7  ;;  %383 = vmatpush3.bf16.msra.mxu1 %v382_v37  ;;  %v391_v46 = vpack.c.bf16 %v161_v45, %v160_v44  ;;  %v394_v49 = vpack.c.bf16 %v163_v48, %v162_v47  ;;  %v164_v50 = vld [vmem:[%s594_s2 + $0x50] sm:$0xff]  ;;  %v165_v51 = vld [vmem:[%s594_s2 + $0x58] sm:$0xff]  ;;  %v166_v53 = vld [vmem:[%s594_s2 + $0x60] sm:$0xff] }
   0xb   :  { %420 = vset.pattern.permute.xlu1 %v430_v17  ;;  %421 = vset.pattern.permute.xlu0 %v431_v18  ;;  %v397_v52 = vpack.c.bf16 %v165_v51, %v164_v50  ;;  %v167_v54 = vld [vmem:[%s594_s2 + $0x68] sm:$0xff]  ;;  %v168_v56 = vld [vmem:[%s594_s2 + $0x70] sm:$0xff]  ;;  %v169_v57 = vld [vmem:[%s594_s2 + $0x78] sm:$0xff] }
   0xc   :  { %45 = vperm.xlu1 %420, %v17_v2   ;;  %51 = vperm.xlu0 %421, %v17_v2   ;;  %v400_v55 = vpack.c.bf16 %v167_v54, %v166_v53  ;;  %v403_v58 = vpack.c.bf16 %v169_v57, %v168_v56 }
   0xd   :  { %365 = vmatpush3.bf16.msra.mxu0 %v364_v14  ;;  %384 = vmatprep.subr.bf16.mxu1 %v427_v7 }
   0xe   :  { %366 = vmatprep.subr.bf16.mxu0 %v427_v7  ;;  %386 = vmatpush3.bf16.msra.mxu1 %v385_v40 }
   0xf   :  { %387 = vmatprep.subr.bf16.mxu1 %v427_v7 }
  0x10   :  { %422 = vset.pattern.permute.xlu1 %v432_v22  ;;  %424 = vset.pattern.permute.xlu0 %v433_v23  ;;  %v252_v22 = vld [vmem:[%s595_s3] ss:$0 sm:$0xff] }
  0x11   :  { %57 = vperm.xlu1 %422, %v17_v2   ;;  %368 = vmatpush3.bf16.msra.mxu0 %v367_v19 }
  0x12   :  { %369 = vmatprep.subr.bf16.mxu0 %v427_v7  ;;  %389 = vmatpush3.bf16.msra.mxu1 %v388_v43 }
  0x13   :  { %390 = vmatprep.subr.bf16.mxu1 %v427_v7 }
  0x15   :  { %423 = vset.pattern.permute.xlu1 %v433_v23  ;;  %371 = vmatpush3.bf16.msra.mxu0 %v370_v24 }
  0x16   :  { %63 = vperm.xlu1 %423, %v17_v2   ;;  %372 = vmatprep.subr.bf16.mxu0 %v427_v7 }
  0x17   :  { %392 = vmatpush3.bf16.msra.mxu1 %v391_v46 }
  0x18   :  { %393 = vmatprep.subr.bf16.mxu1 %v427_v7 }
  0x19   :  { %374 = vmatpush3.bf16.msra.mxu0 %v373_v27 }
  0x1a   :  { %375 = vmatprep.subr.bf16.mxu0 %v427_v7 }
  0x1b   :  { %395 = vmatpush3.bf16.msra.mxu1 %v394_v49 }
  0x1c   :  { %396 = vmatprep.subr.bf16.mxu1 %v427_v7 }
  0x1d   :  { %377 = vmatpush3.bf16.msra.mxu0 %v376_v30 }
  0x1e   :  { %378 = vmatprep.subr.bf16.mxu0 %v427_v7 }
  0x1f   :  { %398 = vmatpush3.bf16.msra.mxu1 %v397_v52 }
  0x20   :  { %399 = vmatprep.subr.bf16.mxu1 %v427_v7 }
  0x21   :  { %380 = vmatpush3.bf16.msra.mxu0 %v379_v39 }
  0x23   :  { %401 = vmatpush3.bf16.msra.mxu1 %v400_v55 }
  0x24   :  { %402 = vmatprep.subr.bf16.mxu1 %v427_v7 }
  0x27   :  { %404 = vmatpush3.bf16.msra.mxu1 %v403_v58 }
  0x81   :  { %v34_v60 = vpop.permute.xlu1 %33  ;;  %v22_v61 = vpop.permute.xlu0 %21 }
  0x82   :  { %vm23_vm1 = vcmp.eq.s32.totalorder %v22_v61, %v19_v62  ;;  %vm35_vm2 = vcmp.eq.s32.totalorder %v34_v60, %v19_v62 }
  0x83   :  { %v24_v1 = vsel %vm23_vm1, 1.0, %v435_v31  ;;  %v36_v4 = vsel %vm35_vm2, 1.0, %v435_v31 }
  0x86   :  { %v40_v63 = vpop.permute.xlu1 %39  ;;  %v28_v0 = vpop.permute.xlu0 %27 }
  0x87   :  { %vm29_vm3 = vcmp.eq.s32.totalorder %v28_v0, %v19_v62  ;;  %vm41_vm4 = vcmp.eq.s32.totalorder %v40_v63, %v19_v62 }
  0x88   :  { %v30_v2 = vsel %vm29_vm3, 1.0, %v435_v31  ;;  %v42_v8 = vsel %vm41_vm4, 1.0, %v435_v31 }
  0x89   :  { %v31_v3 = vadd.f32 %v30_v2, %v24_v1 }
  0x8b   :  { %v37_v5 = vadd.f32 %v36_v4, %v31_v3  ;;  %v46_v6 = vpop.permute.xlu1 %45  ;;  %v52_v7 = vpop.permute.xlu0 %51 }
  0x8c   :  { %vm47_vm5 = vcmp.eq.s32.totalorder %v46_v6, %v19_v62  ;;  %vm53_vm6 = vcmp.eq.s32.totalorder %v52_v7, %v19_v62 }
  0x8d   :  { %v43_v9 = vadd.f32 %v42_v8, %v37_v5  ;;  %v48_v10 = vsel %vm47_vm5, 1.0, %v435_v31  ;;  %v54_v12 = vsel %vm53_vm6, 1.0, %v435_v31 }
  0x8f   :  { %v49_v11 = vadd.f32 %v48_v10, %v43_v9 }
  0x90   :  { %v58_v13 = vpop.permute.xlu1 %57 }
  0x91   :  { %vm59_vm7 = vcmp.eq.s32.totalorder %v58_v13, %v19_v62  ;;  %v55_v14 = vadd.f32 %v54_v12, %v49_v11 }
  0x92   :  { %v60_v15 = vsel %vm59_vm7, 1.0, %v435_v31 }
  0x93   :  { %v61_v17 = vadd.f32 %v60_v15, %v55_v14 }
  0x95   :  { %v64_v16 = vpop.permute.xlu1 %63 }
  0x96   :  { %vm65_vm8 = vcmp.eq.s32.totalorder %v64_v16, %v19_v62 }
  0x97   :  { %v66_v18 = vsel %vm65_vm8, 1.0, %v435_v31 }
  0x98   :  { %v67_v19 = vadd.f32 %v66_v18, %v61_v17 }
  0x9a   :  { %320 = vmatmul.mubr.f32.vlgmr.msra.gmra.mrb[0].mxu0 %v67_v19 }
 0x16d   :  { %v150_v20 = vpop.f32.mrb[0].mxu0 }
 0x16e   :  { %v321_v21 = vpop.f32.mrb[1].mxu0  ;;  %355 = vmatmul.mubr.f32.vlgmr.msra.gmra.mrb[0].mxu1 %v150_v20 }
 0x241   :  { %v243_v23 = vpop.f32.mrb[0].mxu1 }
 0x242   :  { %v244_v24 = vadd.f32 %v252_v22, %v243_v23  ;;  %v356_v25 = vpop.f32.mrb[1].mxu1 }
 0x244   :  { %247 = vst [vmem:[%s596_s4] sm:$0xff] %v244_v24 }

</bundles_post_ra>
